<compile_context>
chip_gen: v5e
topology: v5e:2x2
jax: 0.10.0
libtpu: 0.0.40
codegen_flags: <defaults>
</compile_context>

<pallas_src>
import numpy as np
import jax
import jax.numpy as jnp
from jax import lax
from jax.experimental import pallas as pl
from jax.experimental.pallas import tpu as pltpu


# --------------------------------------------------------------------------
# Encode kernel: one batch block of both views -> normalized embeddings.
#   scale_ref : SMEM (1,)      exp(logit_scale), precomputed in the wrapper
#   x1_ref    : VMEM (tb, S*H) bf16 block of sentence_features1 (flattened)
#   x2_ref    : VMEM (tb, S*H) bf16 block of sentence_features2 (flattened)
#   w_ref     : VMEM (S*H, D)  f32 stacked projection (1/S folded in)
#   a_ref     : VMEM (tb, D)   normalized * exp(logit_scale) embeddings (model1)
#   b_ref     : VMEM (tb, D)   normalized embeddings (model2)
# --------------------------------------------------------------------------
def _ct_encode_kernel(scale_ref, x1_ref, x2_ref, w_ref, a_ref, b_ref):
    w = w_ref[...]                 # (S*H, D), already scaled by 1/S
    scale = scale_ref[0]           # exp(logit_scale)

    def encode_normalize(x_bf16):
        # fused sum-pool + projection: single lane-dense MXU matmul
        emb = jnp.dot(x_bf16.astype(jnp.float32), w,
                      preferred_element_type=jnp.float32)        # (tb, D)
        ss = jnp.sum(emb * emb, axis=-1, keepdims=True)          # (tb, 1)
        return emb * lax.rsqrt(jnp.maximum(ss, 1e-24))           # cos-norm

    # scale folded into the "a" side: (a_n * s) . b_n == (a_n . b_n) * s
    a_ref[...] = encode_normalize(x1_ref[...]) * scale
    b_ref[...] = encode_normalize(x2_ref[...])


# --------------------------------------------------------------------------
# Loss kernel: CT in-batch-negatives loss on the (B, D) embeddings.
#   a_ref : VMEM (B, D)  scaled, normalized embeddings (model1)
#   b_ref : VMEM (B, D)  normalized embeddings (model2)
#   loss  : SMEM (1, 1)  scalar
# --------------------------------------------------------------------------
def _ct_loss_kernel(a_ref, b_ref, loss_ref):
    a = a_ref[...]
    b = b_ref[...]
    # scores = (a_n b_n^T) * exp(logit_scale); contraction on last dims
    # (at large B, verify via pl.lower_as_mlir that no hidden vxpose of b
    #  is inserted; pre-transpose b if it is).
    scores = lax.dot_general(
        a, b, dimension_numbers=(((1,), (1,)), ((), ())),
        preferred_element_type=jnp.float32)                      # (B, B)
    B = scores.shape[0]

    # per-row / per-column maxes: robust even if logit_scale trains large
    m_r = jnp.max(scores, axis=1, keepdims=True)                 # (B, 1)
    m_c = jnp.max(scores, axis=0, keepdims=True)                 # (1, B)
    lse_r = jnp.log(jnp.sum(jnp.exp(scores - m_r), axis=1, keepdims=True)) + m_r
    lse_c = jnp.log(jnp.sum(jnp.exp(scores - m_c), axis=0, keepdims=True)) + m_c

    # diagonal directly from the embeddings: sum_i (a_i . b_i) == sum_i scores[i,i]
    diag_sum = jnp.sum(a * b)

    # 0.5*(CE(scores, arange) + CE(scores.T, arange))
    #   = (0.5*(sum lse_r + sum lse_c) - sum diag) / B
    loss_ref[0, 0] = (0.5 * (jnp.sum(lse_r) + jnp.sum(lse_c)) - diag_sum) / B


# --------------------------------------------------------------------------
# Wrapper
# --------------------------------------------------------------------------
def _vmem_capacity_bytes():
    try:
        return int(pltpu.get_tpu_info().vmem_capacity_bytes)
    except Exception:
        return 64 * 1024 * 1024          # conservative (v7x per-TC VMEM)


def _pick_batch_tile(B, SH, D, x_itemsize, budget_bytes):
    """Largest batch tile (multiple of 8, dividing B) that fits the budget."""
    def vmem_need(tb):
        return (2 * 2 * tb * SH * x_itemsize   # x1 + x2 blocks, double-buffered
                + 2 * SH * D * 4               # w_stack, double-buffered
                + 2 * 2 * tb * D * 4)          # a + b output blocks, double-buffered

    if B % 8 != 0:
        return B, vmem_need(B)                 # tiny batch: one full-array block
    candidates = [t for t in range(8, B + 1, 8) if B % t == 0]
    for tb in sorted(candidates, reverse=True):
        if vmem_need(tb) <= budget_bytes:
            return tb, vmem_need(tb)
    return candidates[0], vmem_need(candidates[0])


def ct_in_batch_negatives_loss(x1, x2, w, logit_scale, *, tb=None):
    """Encode(x1), encode(x2) (Pallas, batch-parallel) + CT in-batch loss."""
    B, S, H = x1.shape
    H_w, D = w.shape
    assert H_w == H
    SH = S * H

    # bf16 token features in HBM (kernel is HBM-bound; halves bytes read),
    # flattened to lane-dense (B, S*H)
    x1_flat = x1.reshape(B, SH).astype(jnp.bfloat16)
    x2_flat = x2.reshape(B, SH).astype(jnp.bfloat16)

    # fold the mean-pool 1/S into a stacked (S*H, D) projection:
    #   w_stack[s*H + h, :] = w[h, :] / S
    w_stack = jnp.tile(w.astype(jnp.float32) * (1.0 / S), (S, 1))   # (S*H, D)

    # exp(logit_scale) precomputed once outside the kernel
    scale_exp = jnp.exp(logit_scale.astype(jnp.float32)).reshape((1,))

    # batch tile sized against this generation's VMEM (v7x: 64 MiB; v5e/v6e: 128)
    budget = int(0.70 * _vmem_capacity_bytes())
    if tb is None:
        tb, _ = _pick_batch_tile(B, SH, D, 2, budget)
    assert B % tb == 0 and (tb % 8 == 0 or tb == B), \
        "batch tile must divide B and be a multiple of 8 (or the full batch)"
    nb = B // tb

    # ---- encode: batch-parallel grid (both TensorCores usable on v7x) -----
    a_scaled, b_n = pl.pallas_call(
        _ct_encode_kernel,
        out_shape=(jax.ShapeDtypeStruct((B, D), jnp.float32),
                   jax.ShapeDtypeStruct((B, D), jnp.float32)),
        grid_spec=pltpu.PrefetchScalarGridSpec(
            num_scalar_prefetch=1,
            grid=(nb,),
            in_specs=[
                pl.BlockSpec((tb, SH), lambda i, s: (i, 0)),    # x1 block
                pl.BlockSpec((tb, SH), lambda i, s: (i, 0)),    # x2 block
                pl.BlockSpec((SH, D), lambda i, s: (0, 0)),     # w resident
            ],
            out_specs=[
                pl.BlockSpec((tb, D), lambda i, s: (i, 0)),     # a (scaled)
                pl.BlockSpec((tb, D), lambda i, s: (i, 0)),     # b
            ],
        ),
        compiler_params=pltpu.CompilerParams(
            dimension_semantics=("parallel",),
            vmem_limit_bytes=budget),
    )(scale_exp, x1_flat, x2_flat, w_stack)

    # ---- loss: small epilogue on the (B, D) embeddings ---------------------
    loss = pl.pallas_call(
        _ct_loss_kernel,
        out_shape=jax.ShapeDtypeStruct((1, 1), jnp.float32),
        in_specs=[pl.BlockSpec(memory_space=pltpu.MemorySpace.VMEM),
                  pl.BlockSpec(memory_space=pltpu.MemorySpace.VMEM)],
        out_specs=pl.BlockSpec(memory_space=pltpu.MemorySpace.SMEM),
    )(a_scaled, b_n)
    return loss[0, 0]


# --------------------------------------------------------------------------
# Pure-JAX reference (mirrors the PyTorch module's forward semantics; inputs
# cast to bf16 to match the kernel's HBM storage dtype).
# --------------------------------------------------------------------------
def _reference(x1, x2, w, logit_scale):
    def enc(x):
        xf = x.astype(jnp.bfloat16).astype(jnp.float32)
        pooled = jnp.mean(xf, axis=1)
        return jnp.dot(pooled, w.astype(jnp.float32),
                       precision=lax.Precision.HIGHEST)

    a, b = enc(x1), enc(x2)
    a_n = a / jnp.maximum(jnp.linalg.norm(a, axis=-1, keepdims=True), 1e-12)
    b_n = b / jnp.maximum(jnp.linalg.norm(b, axis=-1, keepdims=True), 1e-12)
    scores = jnp.dot(a_n, b_n.T, precision=lax.Precision.HIGHEST) * jnp.exp(logit_scale)
    labels = jnp.arange(scores.shape[0])

    def ce(logits):
        logp = jax.nn.log_softmax(logits, axis=-1)
        return -jnp.mean(logp[jnp.arange(logits.shape[0]), labels])

    return 0.5 * (ce(scores) + ce(scores.T))


if __name__ == "__main__":
    B, S, H, D = 16, 8, 32, 128   # S*H = 256 and D = 128: lane-dense blocks
    key = jax.random.PRNGKey(0)
    k1, k2, k3 = jax.random.split(key, 3)

    # sentence_features1 / sentence_features2 (synthetic token features)
    x1 = jax.random.normal(k1, (B, S, H), dtype=jnp.float32)
    x2 = jax.random.normal(k2, (B, S, H), dtype=jnp.float32)

    # encoder weights: model1 is a deepcopy of model2 -> identical weights
    w = jax.random.normal(k3, (H, D), dtype=jnp.float32) * 0.1

    # logit_scale parameter init: log(scale), scale = 20.0
    logit_scale = jnp.array(np.log(20.0), dtype=jnp.float32)

    loss = ct_in_batch_negatives_loss(x1, x2, w, logit_scale)
    loss = jax.block_until_ready(loss)

    ref = _reference(x1, x2, w, logit_scale)
    np.testing.assert_allclose(np.asarray(loss), np.asarray(ref),
                               rtol=1e-3, atol=1e-3)

    print("KERNEL_OK")
</pallas_src>

<mosaic_0001>
module attributes {stable_mosaic.version = 11 : i64} {
  func.func @_ct_encode_kernel(%arg0: i32, %arg1: memref<1xf32, #tpu.memory_space<smem>>, %arg2: memref<16x256xbf16, #tpu.memory_space<vmem>>, %arg3: memref<16x256xbf16, #tpu.memory_space<vmem>>, %arg4: memref<256x128xf32, #tpu.memory_space<vmem>>, %arg5: memref<16x128xf32, #tpu.memory_space<vmem>>, %arg6: memref<16x128xf32, #tpu.memory_space<vmem>>) attributes {dimension_semantics = [#tpu.dimension_semantics<parallel>], iteration_bounds = array<i64: 1>, scalar_prefetch = 1 : i64, scratch_operands = 0 : i64, tpu.core_type = #tpu.core_type<tc>, window_params = [{transform_indices = @transform_0, window_bounds = array<i64: 16, 256>}, {transform_indices = @transform_1, window_bounds = array<i64: 16, 256>}, {pipeline_mode = #tpu.pipeline_mode<synchronous>, transform_indices = @transform_2, window_bounds = array<i64: 256, 128>}, {transform_indices = @transform_3, window_bounds = array<i64: 16, 128>}, {transform_indices = @transform_4, window_bounds = array<i64: 16, 128>}]} {
    %c0 = arith.constant 0 : index
    %c0_0 = arith.constant 0 : index
    %0 = vector.load %arg4[%c0, %c0_0] : memref<256x128xf32, #tpu.memory_space<vmem>>, vector<256x128xf32>
    %c0_1 = arith.constant 0 : index
    %1 = memref.load %arg1[%c0_1] : memref<1xf32, #tpu.memory_space<smem>>
    %c0_2 = arith.constant 0 : index
    %c0_3 = arith.constant 0 : index
    %2 = vector.load %arg2[%c0_2, %c0_3] : memref<16x256xbf16, #tpu.memory_space<vmem>>, vector<16x256xbf16>
    %3 = arith.extf %2 : vector<16x256xbf16> to vector<16x256xf32>
    %cst = arith.constant dense<0.000000e+00> : vector<16x128xf32>
    %4 = tpu.matmul %3, %0, %cst {dimension_numbers = #tpu.dot_dimension_numbers<[1], [0], [0], [1], [0, 0, 1, 1], [], []>} : vector<16x256xf32>, vector<256x128xf32>, vector<16x128xf32> -> vector<16x128xf32>
    %5 = arith.mulf %4, %4 : vector<16x128xf32>
    %cst_4 = arith.constant dense<0.000000e+00> : vector<16xf32>
    %6 = vector.multi_reduction <add>, %5, %cst_4 [1] : vector<16x128xf32> to vector<16xf32>
    %7 = vector.shape_cast %6 : vector<16xf32> to vector<16x1xf32>
    %cst_5 = arith.constant 1.000000e-24 : f32
    %8 = vector.broadcast %cst_5 : f32 to vector<16x1xf32>
    %9 = arith.maximumf %7, %8 : vector<16x1xf32>
    %10 = math.rsqrt %9 : vector<16x1xf32>
    %11 = vector.broadcast %10 : vector<16x1xf32> to vector<16x128xf32>
    %12 = arith.mulf %4, %11 : vector<16x128xf32>
    %13 = vector.broadcast %1 : f32 to vector<16x128xf32>
    %14 = arith.mulf %12, %13 : vector<16x128xf32>
    %c0_6 = arith.constant 0 : index
    %c0_7 = arith.constant 0 : index
    %15 = vector.load %arg5[%c0_6, %c0_7] : memref<16x128xf32, #tpu.memory_space<vmem>>, vector<16x128xf32>
    tpu.vector_store %arg5[%c0_6, %c0_7], %14 {strides = array<i32>} : memref<16x128xf32, #tpu.memory_space<vmem>>, vector<16x128xf32>,
    %c0_8 = arith.constant 0 : index
    %c0_9 = arith.constant 0 : index
    %16 = vector.load %arg3[%c0_8, %c0_9] : memref<16x256xbf16, #tpu.memory_space<vmem>>, vector<16x256xbf16>
    %17 = arith.extf %16 : vector<16x256xbf16> to vector<16x256xf32>
    %cst_10 = arith.constant dense<0.000000e+00> : vector<16x128xf32>
    %18 = tpu.matmul %17, %0, %cst_10 {dimension_numbers = #tpu.dot_dimension_numbers<[1], [0], [0], [1], [0, 0, 1, 1], [], []>} : vector<16x256xf32>, vector<256x128xf32>, vector<16x128xf32> -> vector<16x128xf32>
    %19 = arith.mulf %18, %18 : vector<16x128xf32>
    %cst_11 = arith.constant dense<0.000000e+00> : vector<16xf32>
    %20 = vector.multi_reduction <add>, %19, %cst_11 [1] : vector<16x128xf32> to vector<16xf32>
    %21 = vector.shape_cast %20 : vector<16xf32> to vector<16x1xf32>
    %cst_12 = arith.constant 1.000000e-24 : f32
    %22 = vector.broadcast %cst_12 : f32 to vector<16x1xf32>
    %23 = arith.maximumf %21, %22 : vector<16x1xf32>
    %24 = math.rsqrt %23 : vector<16x1xf32>
    %25 = vector.broadcast %24 : vector<16x1xf32> to vector<16x128xf32>
    %26 = arith.mulf %18, %25 : vector<16x128xf32>
    %c0_13 = arith.constant 0 : index
    %c0_14 = arith.constant 0 : index
    %27 = vector.load %arg6[%c0_13, %c0_14] : memref<16x128xf32, #tpu.memory_space<vmem>>, vector<16x128xf32>
    tpu.vector_store %arg6[%c0_13, %c0_14], %26 {strides = array<i32>} : memref<16x128xf32, #tpu.memory_space<vmem>>, vector<16x128xf32>,
    return
  }
  func.func @transform_0(%arg0: i32, %arg1: memref<1xf32, #tpu.memory_space<smem>>) -> (i32, i32) {
    %c0_i32 = arith.constant 0 : i32
    %c0_i32_0 = arith.constant 0 : i32
    return %arg0, %c0_i32 : i32, i32
  }
  func.func @transform_1(%arg0: i32, %arg1: memref<1xf32, #tpu.memory_space<smem>>) -> (i32, i32) {
    %c0_i32 = arith.constant 0 : i32
    %c0_i32_0 = arith.constant 0 : i32
    return %arg0, %c0_i32 : i32, i32
  }
  func.func @transform_2(%arg0: i32, %arg1: memref<1xf32, #tpu.memory_space<smem>>) -> (i32, i32) {
    %c0_i32 = arith.constant 0 : i32
    %c0_i32_0 = arith.constant 0 : i32
    %c0_i32_1 = arith.constant 0 : i32
    return %c0_i32, %c0_i32_0 : i32, i32
  }
  func.func @transform_3(%arg0: i32, %arg1: memref<1xf32, #tpu.memory_space<smem>>) -> (i32, i32) {
    %c0_i32 = arith.constant 0 : i32
    %c0_i32_0 = arith.constant 0 : i32
    return %arg0, %c0_i32 : i32, i32
  }
  func.func @transform_4(%arg0: i32, %arg1: memref<1xf32, #tpu.memory_space<smem>>) -> (i32, i32) {
    %c0_i32 = arith.constant 0 : i32
    %c0_i32_0 = arith.constant 0 : i32
    return %arg0, %c0_i32 : i32, i32
  }
}

</mosaic_0001>

<bundles_post_ra>
// kernel: tpu_custom_call.1
= control target key start
LH: loop header
LB: loop body
LE: loop exit
PB: predicated region body
PF: predicated region fallthrough
CT: control target
= control target key end

     0   :  { %12 = vsyncpa [#allocation5], 0  ;;  %s537_s0 = inlined_call_operand.<no memory space> [shape: f32[1], index: 0, kind: input, shape index: {}]   ;;  %s538_s1 = inlined_call_operand.hbm [shape: bf16[16,256], index: 1, kind: input, shape index: {}]   ;;  %s539_s2 = inlined_call_operand.hbm [shape: bf16[16,256], index: 2, kind: input, shape index: {}]   ;;  %s540_s3 = inlined_call_operand.hbm [shape: f32[256,128], index: 3, kind: input, shape index: {}]   ;;  %s541_s4 = inlined_call_operand.hbm [shape: f32[16,128], index: 4, kind: output, shape index: {0}]   ;;  %s542_s5 = inlined_call_operand.hbm [shape: f32[16,128], index: 5, kind: output, shape index: {1}]  }
   0x1   :  { %13 = vsyncpa [#allocation8], 0 }
   0x2   :  { %14 = vsyncpa [#allocation6], 0 }
   0x3   :  { %15 = vsyncpa [#allocation12], 0  ;;  %s33_s20 = sshll.u32 %s539_s2, 4  ;;  %s452_s21 = smov [#allocation7]   ;;  %s34_s20 = int_to_ptr.hbm [resolvable:$true] %s33_s20 }
   0x4   :  { %s35_s22 = sshll.u32 %s452_s21, 4  ;;  %s20_s25 = sshll.u32 %s538_s1, 4  ;;  %s36_s22 = int_to_ptr.vmem [resolvable:$true] %s35_s22  ;;  %s21_s25 = int_to_ptr.hbm [resolvable:$true] %s20_s25 }
   0x5   :  { %s453_s26 = smov 128   ;;  %s454_s27 = smov 8  }
   0x6   :  { %41 = dma.hbm_to_vmem [thread:$0]  %s34_s20, 256, %s36_s22, [#allocation8], %s453_s26, %s453_s26, %s454_s27  }
   0x7   :  { %s455_s28 = smov [#allocation4]   ;;  %s46_s2 = sshll.u32 %s540_s3, 4  ;;  %s47_s2 = int_to_ptr.hbm [resolvable:$true] %s46_s2 }
   0x8   :  { %s22_s29 = sshll.u32 %s455_s28, 4  ;;  %s456_s1 = smov [#allocation9]   ;;  %s23_s29 = int_to_ptr.vmem [resolvable:$true] %s22_s29 }
   0x9   :  { %28 = dma.hbm_to_vmem [thread:$0]  %s21_s25, 256, %s23_s29, [#allocation5], %s453_s26, %s453_s26, %s454_s27  }
   0xa   :  { %s48_s7 = sshll.u32 %s456_s1, 4  ;;  %s49_s7 = int_to_ptr.vmem [resolvable:$true] %s48_s7 }
   0xb   :  { %54 = dma.hbm_to_vmem [thread:$0]  %s47_s2, 4096, %s49_s7, [#allocation8], %s453_s26, %s453_s26, %s454_s27  }
   0xc   :  { %444 = dma.done.wait [#allocation5], 256  }
   0xd   :  { %445 = vsyncadd [#allocation5], 4294967040 }
   0xe   :  { %446 = dma.done.wait [#allocation8], 4352  }
   0xf   :  { %447 = vsyncadd [#allocation8], 4294962944  ;;  %v82_v0 = vld [vmem:[#allocation9 + $0x78] sm:$0xff]  ;;  %v81_v2 = vld [vmem:[#allocation9 + $0x70] sm:$0xff]  ;;  %s277_s12 = sshll.u32 %s541_s4, 4  ;;  %s458_s13 = smov [#allocation11]   ;;  %s278_s12 = int_to_ptr.hbm [resolvable:$true] %s277_s12 }
  0x10   :  { %v98_v1 = vld [vmem:[#allocation9 + $0xf8] sm:$0xff]  ;;  %106 = vmatpush.msra.mxu0 %v82_v0  ;;  %v97_v3 = vld [vmem:[#allocation9 + $0xf0] sm:$0xff]  ;;  %193 = vmatpush.msra.mxu2 %v82_v0  ;;  %v80_v4 = vld [vmem:[#allocation9 + $0x68] sm:$0xff]  ;;  %s288_s14 = sshll.u32 %s458_s13, 4  ;;  %s290_s4 = sshll.u32 %s542_s5, 4  ;;  %s289_s14 = int_to_ptr.vmem [resolvable:$true] %s288_s14  ;;  %s291_s4 = int_to_ptr.hbm [resolvable:$true] %s290_s4 }
  0x11   :  { %129 = vmatpush.msra.mxu1 %v98_v1  ;;  %216 = vmatpush.msra.mxu3 %v98_v1  ;;  %v96_v5 = vld [vmem:[#allocation9 + $0xe8] sm:$0xff]  ;;  %v79_v6 = vld [vmem:[#allocation9 + $0x60] sm:$0xff]  ;;  %v78_v8 = vld [vmem:[#allocation9 + $0x58] sm:$0xff] }
  0x12   :  { %107 = vmatpush.msra.mxu0 %v81_v2  ;;  %194 = vmatpush.msra.mxu2 %v81_v2  ;;  %v95_v7 = vld [vmem:[#allocation9 + $0xe0] sm:$0xff]  ;;  %v94_v9 = vld [vmem:[#allocation9 + $0xd8] sm:$0xff]  ;;  %v77_v10 = vld [vmem:[#allocation9 + $0x50] sm:$0xff] }
  0x13   :  { %130 = vmatpush.msra.mxu1 %v97_v3  ;;  %217 = vmatpush.msra.mxu3 %v97_v3  ;;  %v93_v11 = vld [vmem:[#allocation9 + $0xd0] sm:$0xff]  ;;  %v76_v12 = vld [vmem:[#allocation9 + $0x48] sm:$0xff]  ;;  %v75_v14 = vld [vmem:[#allocation9 + $0x40] sm:$0xff] }
  0x14   :  { %108 = vmatpush.msra.mxu0 %v80_v4  ;;  %195 = vmatpush.msra.mxu2 %v80_v4  ;;  %v92_v13 = vld [vmem:[#allocation9 + $0xc8] sm:$0xff]  ;;  %v91_v15 = vld [vmem:[#allocation9 + $0xc0] sm:$0xff]  ;;  %v74_v16 = vld [vmem:[#allocation9 + $0x38] sm:$0xff] }
  0x15   :  { %131 = vmatpush.msra.mxu1 %v96_v5  ;;  %218 = vmatpush.msra.mxu3 %v96_v5  ;;  %v90_v17 = vld [vmem:[#allocation9 + $0xb8] sm:$0xff]  ;;  %v73_v18 = vld [vmem:[#allocation9 + $0x30] sm:$0xff]  ;;  %v72_v20 = vld [vmem:[#allocation9 + $0x28] sm:$0xff] }
  0x16   :  { %109 = vmatpush.msra.mxu0 %v79_v6  ;;  %196 = vmatpush.msra.mxu2 %v79_v6  ;;  %v89_v19 = vld [vmem:[#allocation9 + $0xb0] sm:$0xff]  ;;  %v88_v21 = vld [vmem:[#allocation9 + $0xa8] sm:$0xff]  ;;  %v71_v22 = vld [vmem:[#allocation9 + $0x20] sm:$0xff] }
  0x17   :  { %132 = vmatpush.msra.mxu1 %v95_v7  ;;  %219 = vmatpush.msra.mxu3 %v95_v7  ;;  %v87_v23 = vld [vmem:[#allocation9 + $0xa0] sm:$0xff]  ;;  %v70_v24 = vld [vmem:[#allocation9 + $0x18] sm:$0xff]  ;;  %v69_v26 = vld [vmem:[#allocation9 + $0x10] sm:$0xff] }
  0x18   :  { %110 = vmatpush.msra.mxu0 %v78_v8  ;;  %197 = vmatpush.msra.mxu2 %v78_v8  ;;  %v86_v25 = vld [vmem:[#allocation9 + $0x98] sm:$0xff]  ;;  %v85_v27 = vld [vmem:[#allocation9 + $0x90] sm:$0xff]  ;;  %v68_v28 = vld [vmem:[#allocation9 + $0x8] sm:$0xff] }
  0x19   :  { %133 = vmatpush.msra.mxu1 %v94_v9  ;;  %220 = vmatpush.msra.mxu3 %v94_v9  ;;  %v84_v29 = vld [vmem:[#allocation9 + $0x88] sm:$0xff]  ;;  %v100_v30 = vld [vmem:[#allocation4] sm:$0xff]  ;;  %v187_v31 = vld [vmem:[#allocation7] sm:$0xff] }
  0x1a   :  { %111 = vmatpush.msra.mxu0 %v77_v10  ;;  %198 = vmatpush.msra.mxu2 %v77_v10  ;;  %v67_v32 = vld [vmem:[#allocation9] sm:$0xff]  ;;  %v102_v34 = vunpack.c.l.bf16 %v100_v30  ;;  %v103_v35 = vunpack.c.h.bf16 %v100_v30  ;;  %v189_v36 = vunpack.c.l.bf16 %v187_v31  ;;  %v190_v37 = vunpack.c.h.bf16 %v187_v31  ;;  %v101_v38 = vld [vmem:[#allocation4 + $0x8] sm:$0xff]  ;;  %v188_v39 = vld [vmem:[#allocation7 + $0x8] sm:$0xff] }
  0x1b   :  { %134 = vmatpush.msra.mxu1 %v93_v11  ;;  %221 = vmatpush.msra.mxu3 %v93_v11  ;;  %v83_v33 = vld [vmem:[#allocation9 + $0x80] sm:$0xff]  ;;  %v104_v40 = vunpack.c.l.bf16 %v101_v38  ;;  %v105_v41 = vunpack.c.h.bf16 %v101_v38  ;;  %v191_v42 = vunpack.c.l.bf16 %v188_v39  ;;  %v192_v43 = vunpack.c.h.bf16 %v188_v39 }
  0x1c   :  { %112 = vmatpush.msra.mxu0 %v76_v12  ;;  %199 = vmatpush.msra.mxu2 %v76_v12 }
  0x1d   :  { %135 = vmatpush.msra.mxu1 %v92_v13  ;;  %222 = vmatpush.msra.mxu3 %v92_v13 }
  0x1e   :  { %113 = vmatpush.msra.mxu0 %v75_v14  ;;  %200 = vmatpush.msra.mxu2 %v75_v14 }
  0x1f   :  { %136 = vmatpush.msra.mxu1 %v91_v15  ;;  %223 = vmatpush.msra.mxu3 %v91_v15 }
  0x20   :  { %114 = vmatpush.msra.mxu0 %v74_v16  ;;  %201 = vmatpush.msra.mxu2 %v74_v16 }
  0x21   :  { %137 = vmatpush.msra.mxu1 %v90_v17  ;;  %224 = vmatpush.msra.mxu3 %v90_v17  ;;  %v182_v17 = vstv %s537_s0  ;;  %s457_s0 = smov [#allocation10]  }
  0x22   :  { %115 = vmatpush.msra.mxu0 %v73_v18  ;;  %202 = vmatpush.msra.mxu2 %v73_v18  ;;  %s275_s9 = sshll.u32 %s457_s0, 4  ;;  %s276_s9 = int_to_ptr.vmem [resolvable:$true] %s275_s9 }
  0x23   :  { %138 = vmatpush.msra.mxu1 %v89_v19  ;;  %225 = vmatpush.msra.mxu3 %v89_v19 }
  0x24   :  { %116 = vmatpush.msra.mxu0 %v72_v20  ;;  %203 = vmatpush.msra.mxu2 %v72_v20 }
  0x25   :  { %139 = vmatpush.msra.mxu1 %v88_v21  ;;  %226 = vmatpush.msra.mxu3 %v88_v21 }
  0x26   :  { %117 = vmatpush.msra.mxu0 %v71_v22  ;;  %204 = vmatpush.msra.mxu2 %v71_v22 }
  0x27   :  { %140 = vmatpush.msra.mxu1 %v87_v23  ;;  %227 = vmatpush.msra.mxu3 %v87_v23 }
  0x28   :  { %118 = vmatpush.msra.mxu0 %v70_v24  ;;  %205 = vmatpush.msra.mxu2 %v70_v24 }
  0x29   :  { %141 = vmatpush.msra.mxu1 %v86_v25  ;;  %228 = vmatpush.msra.mxu3 %v86_v25 }
  0x2a   :  { %119 = vmatpush.msra.mxu0 %v69_v26  ;;  %206 = vmatpush.msra.mxu2 %v69_v26 }
  0x2b   :  { %142 = vmatpush.msra.mxu1 %v85_v27  ;;  %229 = vmatpush.msra.mxu3 %v85_v27 }
  0x2c   :  { %120 = vmatpush.msra.mxu0 %v68_v28  ;;  %207 = vmatpush.msra.mxu2 %v68_v28 }
  0x2d   :  { %143 = vmatpush.msra.mxu1 %v84_v29  ;;  %230 = vmatpush.msra.mxu3 %v84_v29 }
  0x2e   :  { %121 = vmatpush.msra.mxu0 %v67_v32  ;;  %208 = vmatpush.msra.mxu2 %v67_v32 }
  0x2f   :  { %144 = vmatpush.msra.mxu1 %v83_v33  ;;  %231 = vmatpush.msra.mxu3 %v83_v33 }
  0x30   :  { %122 = vmatmul.f32.vlgmr.msra.gmra.mxu0 %v102_v34  ;;  %145 = vmatmul.f32.vlgmr.msra.gmra.mxu1 %v103_v35 }
  0x31   :  { %209 = vmatmul.f32.vlgmr.msra.gmra.mxu2 %v189_v36  ;;  %232 = vmatmul.f32.vlgmr.msra.gmra.mxu3 %v190_v37 }
  0x38   :  { %125 = vmatmul.f32.gmra.mxu0 %v104_v40  ;;  %148 = vmatmul.f32.gmra.mxu1 %v105_v41 }
  0x39   :  { %212 = vmatmul.f32.gmra.mxu2 %v191_v42  ;;  %235 = vmatmul.f32.gmra.mxu3 %v192_v43 }
  0xad   :  { %v123_v44 = vpop.f32.mrf.mxu0  ;;  %v146_v45 = vpop.f32.mrf.mxu1 }
  0xae   :  { %v147_v46 = vadd.f32 %v146_v45, %v123_v44 }
  0xb0   :  { %v152_v47 = vmul.f32 %v147_v46, %v147_v46 }
  0xb2   :  { %154 = vadd.xlane.f32.xlu0 %v152_v47 }
  0xb4   :  { %v210_v48 = vpop.f32.mrf.mxu2  ;;  %v233_v49 = vpop.f32.mrf.mxu3 }
  0xb5   :  { %v507_v50 = vadd.f32 %v233_v49, %v210_v48  ;;  %v126_v51 = vpop.f32.mrf.mxu0  ;;  %v149_v52 = vpop.f32.mrf.mxu1 }
  0xb6   :  { %v509_v53 = vadd.f32 %v149_v52, %v126_v51 }
  0xb7   :  { %v239_v54 = vmul.f32 %v507_v50, %v507_v50 }
  0xb8   :  { %v153_v55 = vmul.f32 %v509_v53, %v509_v53 }
  0xb9   :  { %241 = vadd.xlane.f32.xlu1 %v239_v54 }
  0xba   :  { %156 = vadd.xlane.f32.xlu0 %v153_v55 }
  0xbc   :  { %v213_v56 = vpop.f32.mrf.mxu2  ;;  %v236_v57 = vpop.f32.mrf.mxu3 }
  0xbd   :  { %v515_v58 = vadd.f32 %v236_v57, %v213_v56 }
  0xbf   :  { %v240_v59 = vmul.f32 %v515_v58, %v515_v58 }
  0xc1   :  { %243 = vadd.xlane.f32.xlu1 %v240_v59 }
 0x125   :  { %v155_v60 = vpop.xlane.xlu0 %154 }
 0x126   :  { %v158_v61 = vmax.f32 %v155_v60, 1e-24 }
 0x128   :  { %316 = vrsqrt.f32 %v158_v61  ;;  %vm166_vm1 = vweird.f32 %v158_v61 }
 0x12c   :  { %v242_v62 = vpop.xlane.xlu1 %241 }
 0x12d   :  { %v245_v63 = vmax.f32 %v242_v62, 1e-24  ;;  %v157_v0 = vpop.xlane.xlu0 %156 }
 0x12e   :  { %v317_v1 = vpop.eup %316  ;;  %v159_v2 = vmax.f32 %v157_v0, 1e-24 }
 0x12f   :  { %v161_v3 = vmul.f32 %v317_v1, %v158_v61  ;;  %318 = vrsqrt.f32 %v245_v63  ;;  %vm167_vm0 = vweird.f32 %v317_v1  ;;  %vm253_vm5 = vweird.f32 %v245_v63 }
 0x130   :  { %320 = vrsqrt.f32 %v159_v2  ;;  %vm168_vm2 = vmor %vm166_vm1, %vm167_vm0  ;;  %vm176_vm7 = vweird.f32 %v159_v2 }
 0x131   :  { %v162_v4 = vmul.f32 %v317_v1, %v161_v3 }
 0x133   :  { %v163_v5 = vmul.f32 0.5, %v162_v4 }
 0x134   :  { %v244_v6 = vpop.xlane.xlu1 %243 }
 0x135   :  { %v319_v7 = vpop.eup %318  ;;  %v164_v8 = vsub.f32 1.5, %v163_v5  ;;  %v246_v9 = vmax.f32 %v244_v6, 1e-24 }
 0x136   :  { %v321_v10 = vpop.eup %320  ;;  %v248_v11 = vmul.f32 %v319_v7, %v245_v63  ;;  %vm254_vm3 = vweird.f32 %v319_v7 }
 0x137   :  { %v165_v12 = vmul.f32 %v317_v1, %v164_v8  ;;  %v171_v13 = vmul.f32 %v321_v10, %v159_v2  ;;  %322 = vrsqrt.f32 %v246_v9  ;;  %vm177_vm4 = vweird.f32 %v321_v10  ;;  %vm255_vm6 = vmor %vm253_vm5, %vm254_vm3 }
 0x138   :  { %v249_v14 = vmul.f32 %v319_v7, %v248_v11  ;;  %vm178_vm8 = vmor %vm176_vm7, %vm177_vm4  ;;  %vm263_vm10 = vweird.f32 %v246_v9 }
 0x139   :  { %v169_v15 = vsel %vm168_vm2, %v317_v1, %v165_v12  ;;  %v172_v16 = vmul.f32 %v321_v10, %v171_v13 }
 0x13a   :  { %v180_v18 = vmul.f32 %v169_v15, %v147_v46  ;;  %v250_v19 = vmul.f32 0.5, %v249_v14 }
 0x13b   :  { %v173_v20 = vmul.f32 0.5, %v172_v16 }
 0x13c   :  { %v251_v21 = vsub.f32 1.5, %v250_v19  ;;  %v183_v22 = vmul.f32 %v182_v17, %v180_v18 }
 0x13d   :  { %v323_v23 = vpop.eup %322  ;;  %v174_v24 = vsub.f32 1.5, %v173_v20 }
 0x13e   :  { %v252_v25 = vmul.f32 %v319_v7, %v251_v21  ;;  %v258_v26 = vmul.f32 %v323_v23, %v246_v9  ;;  %185 = vst [vmem:[#allocation10] sm:$0xff] %v183_v22  ;;  %vm264_vm9 = vweird.f32 %v323_v23 }
 0x13f   :  { %v175_v27 = vmul.f32 %v321_v10, %v174_v24  ;;  %vm265_vm11 = vmor %vm263_vm10, %vm264_vm9 }
 0x140   :  { %v256_v28 = vsel %vm255_vm6, %v319_v7, %v252_v25  ;;  %v259_v29 = vmul.f32 %v323_v23, %v258_v26 }
 0x141   :  { %v179_v30 = vsel %vm178_vm8, %v321_v10, %v175_v27  ;;  %v267_v31 = vmul.f32 %v256_v28, %v507_v50 }
 0x142   :  { %v181_v32 = vmul.f32 %v179_v30, %v509_v53  ;;  %v260_v33 = vmul.f32 0.5, %v259_v29 }
 0x143   :  { %269 = vst [vmem:[#allocation11] sm:$0xff] %v267_v31 }
 0x144   :  { %v261_v34 = vsub.f32 1.5, %v260_v33  ;;  %v184_v35 = vmul.f32 %v182_v17, %v181_v32 }
 0x146   :  { %v262_v36 = vmul.f32 %v323_v23, %v261_v34  ;;  %186 = vst [vmem:[#allocation10 + $0x8] sm:$0xff] %v184_v35 }
 0x147   :  { %283 = dma.vmem_to_hbm [thread:$0]  %s276_s9, 256, %s278_s12, [#allocation6], %s453_s26, %s453_s26, %s454_s27  }
 0x148   :  { %v266_v37 = vsel %vm265_vm11, %v323_v23, %v262_v36 }
 0x149   :  { %v268_v38 = vmul.f32 %v266_v37, %v515_v58 }
 0x14b   :  { %270 = vst [vmem:[#allocation11 + $0x8] sm:$0xff] %v268_v38 }
 0x14c   :  { %296 = dma.vmem_to_hbm [thread:$0]  %s289_s14, 256, %s291_s4, [#allocation12], %s453_s26, %s453_s26, %s454_s27  }
 0x14d   :  { %448 = dma.done.wait [#allocation6], 256  }
 0x14e   :  { %449 = vsyncadd [#allocation6], 4294967040 }
 0x14f   :  { %450 = dma.done.wait [#allocation12], 256  }
 0x150   :  { %451 = vsyncadd [#allocation12], 4294967040 }
 0x151   :  { %305 = vsyncpa [#allocation5], 1 }
 0x152   :  { %306 = vsyncpa [#allocation8], 1 }
 0x153   :  { %307 = vsyncpa [#allocation6], 1 }
 0x154   :  { %308 = vsyncpa [#allocation12], 1 }

</bundles_post_ra>
